<compile_context>
chip_gen: v6e
topology: v6e:2x2x1
jax: 0.10.0
libtpu: 0.0.40
codegen_flags: <defaults>
</compile_context>

<pallas_src>
import math

import jax
import jax.numpy as jnp
from jax.experimental import pallas as pl
from jax.experimental.pallas import tpu as pltpu


def _round_up(n, m):
    return (n + m - 1) // m * m


def _mlp_kernel(x_ref, w1_ref, b1_ref, w2_ref, b2_ref, w3_ref, b3_ref, o_ref):
    # Shapes seen by the kernel (feature-major):
    #   x_ref : (F, tm)  bf16   activations, rows on lanes
    #   w1_ref: (H, F)   bf16   PyTorch (out, in) layout
    #   b1_ref: (H, 1)   f32
    #   w2_ref: (H, H)   bf16
    #   b2_ref: (H, 1)   f32
    #   w3_ref: (H, 1)   f32    final projection as a column (VPU/XLU path)
    #   b3_ref: (1, 1)   f32
    #   o_ref : (1, tm)  f32    lane-dense output row
    x = x_ref[...]

    # Layer 1: (H, F) @ (F, tm) -> (H, tm), f32 accumulation on the MXU.
    h1 = jnp.dot(w1_ref[...], x, preferred_element_type=jnp.float32) + b1_ref[...]
    h1 = jnp.maximum(h1, 0.0)

    # Layer 2: (H, H) @ (H, tm) -> (H, tm).  Re-feed the MXU in bf16.
    h2 = (jnp.dot(w2_ref[...], h1.astype(jnp.bfloat16),
                  preferred_element_type=jnp.float32) + b2_ref[...])
    h2 = jnp.maximum(h2, 0.0)

    # Layer 3 (256 -> 1): VPU multiply + sublane reduce; a 1-wide matmul RHS
    # would waste an entire MXU pass.  Result is naturally lane-dense.
    o = jnp.sum(h2 * w3_ref[...], axis=0, keepdims=True) + b3_ref[...]
    o_ref[...] = o


def dnn_forward_pallas(x, params, *, tm=256):
    """x: (N, feature_size) float32.  Returns (N, 1) float32."""
    w1, b1, w2, b2, w3, b3 = params
    N, F = x.shape
    H = w1.shape[0]  # 256

    # Tile big enough to fill the MXU, but never bigger than the padded batch
    # (tiny N -> one 128-wide grid step, i.e. "skip the grid").
    tm = max(128, min(tm, _round_up(N, 128)))
    n_pad = _round_up(N, tm)
    num_tiles = n_pad // tm

    # Feature-major, zero-padded, bf16 activations for the MXU.
    x_t = jnp.pad(x.astype(jnp.float32).T, ((0, 0), (0, n_pad - N)))
    x_t = x_t.astype(jnp.bfloat16)
    w1_b = w1.astype(jnp.bfloat16)
    w2_b = w2.astype(jnp.bfloat16)

    full = lambda i: (0, 0)

    out = pl.pallas_call(
        _mlp_kernel,
        out_shape=jax.ShapeDtypeStruct((1, n_pad), jnp.float32),
        grid_spec=pltpu.PrefetchScalarGridSpec(
            num_scalar_prefetch=0,
            grid=(num_tiles,),
            in_specs=[
                pl.BlockSpec((F, tm), lambda i: (0, i)),   # x tile (features, rows)
                pl.BlockSpec((H, F), full),                # W1 (constant index -> DMA'd once)
                pl.BlockSpec((H, 1), full),                # b1
                pl.BlockSpec((H, H), full),                # W2
                pl.BlockSpec((H, 1), full),                # b2
                pl.BlockSpec((H, 1), full),                # W3 column
                pl.BlockSpec((1, 1), full),                # b3
            ],
            out_specs=pl.BlockSpec((1, tm), lambda i: (0, i)),
        ),
        compiler_params=pltpu.CompilerParams(
            dimension_semantics=("parallel",)),  # shards row tiles across TCs (v7x megacore)
    )(x_t, w1_b, b1, w2_b, b2, w3, b3)

    return out[0, :N].reshape(N, 1)


def init_dnn_params(feature_size, key):
    """PyTorch nn.Linear-style init; weights kept in (out, in) layout."""
    ks = jax.random.split(key, 6)

    def linear(kw, kb, fan_in, fan_out):
        bound = 1.0 / math.sqrt(fan_in)
        w = jax.random.uniform(kw, (fan_out, fan_in), jnp.float32, -bound, bound)
        b = jax.random.uniform(kb, (fan_out, 1), jnp.float32, -bound, bound)
        return w, b

    w1, b1 = linear(ks[0], ks[1], feature_size, 256)
    w2, b2 = linear(ks[2], ks[3], 256, 256)
    w3_row, b3 = linear(ks[4], ks[5], 256, 1)
    w3 = w3_row.T            # store final layer as a (256, 1) column for the VPU path
    return (w1, b1, w2, b2, w3, b3)


def dnn_forward(input_list, params):
    """Full DNN.forward semantics: cat along dim 0, fused MLP, split back."""
    x = jnp.concatenate(input_list, axis=0).astype(jnp.float32)
    out = dnn_forward_pallas(x, params)
    chunk = input_list[0].shape[0]
    n = out.shape[0]
    splits = []
    start = 0
    while start < n:
        splits.append(out[start:start + chunk])
        start += chunk
    return tuple(splits)


def _reference_f32(input_list, params):
    w1, b1, w2, b2, w3, b3 = params
    x = jnp.concatenate(input_list, axis=0).astype(jnp.float32)
    h = jnp.maximum(x @ w1.T + b1.T, 0.0)
    h = jnp.maximum(h @ w2.T + b2.T, 0.0)
    return h @ w3 + b3


def _reference_bf16(input_list, params):
    """Same math as the kernel (bf16 matmul operands, f32 accumulation)."""
    w1, b1, w2, b2, w3, b3 = params
    x = jnp.concatenate(input_list, axis=0).astype(jnp.bfloat16)
    h = jnp.dot(x, w1.astype(jnp.bfloat16).T,
                preferred_element_type=jnp.float32) + b1.T
    h = jnp.maximum(h, 0.0)
    h = jnp.dot(h.astype(jnp.bfloat16), w2.astype(jnp.bfloat16).T,
                preferred_element_type=jnp.float32) + b2.T
    h = jnp.maximum(h, 0.0)
    return h @ w3 + b3


def _check(input_list, params):
    outs = jax.block_until_ready(dnn_forward(input_list, params))
    got = jnp.concatenate(outs, axis=0)

    ref_bf16 = _reference_bf16(input_list, params)
    ref_f32 = _reference_f32(input_list, params)
    n_total = sum(int(a.shape[0]) for a in input_list)
    assert got.shape == (n_total, 1)
    # Same-precision reference: should match closely.
    assert jnp.allclose(got, ref_bf16, atol=5e-3, rtol=5e-3)
    # Full-f32 reference: loose tolerance for bf16 matmul operands.
    assert jnp.allclose(got, ref_f32, atol=5e-2, rtol=5e-2)
    return outs


if __name__ == "__main__":
    feature_size = 32
    key = jax.random.PRNGKey(0)
    k_params, k_a, k_b, k_c = jax.random.split(key, 4)

    params = init_dnn_params(feature_size, k_params)

    # Small case (matches the module's typical use): 2 inputs of 8 rows each.
    x_a = jax.random.normal(k_a, (8, feature_size), jnp.float32)
    x_b = jax.random.normal(k_b, (8, feature_size), jnp.float32)
    outs = _check([x_a, x_b], params)
    assert len(outs) == 2 and outs[0].shape == (8, 1) and outs[1].shape == (8, 1)

    # Multi-tile case: 3 inputs of 100 rows (N=300 -> 2 parallel grid steps,
    # exercises row padding and the uneven-tail split path).
    xs = [jax.random.normal(k, (100, feature_size), jnp.float32)
          for k in jax.random.split(k_c, 3)]
    outs2 = _check(xs, params)
    assert len(outs2) == 3 and all(o.shape == (100, 1) for o in outs2)

    print("KERNEL_OK")
</pallas_src>

<mosaic_0001>
module attributes {stable_mosaic.version = 11 : i64} {
  func.func @_mlp_kernel(%arg0: i32, %arg1: memref<32x128xbf16, #tpu.memory_space<vmem>>, %arg2: memref<256x32xbf16, #tpu.memory_space<vmem>>, %arg3: memref<256x1xf32, #tpu.memory_space<vmem>>, %arg4: memref<256x256xbf16, #tpu.memory_space<vmem>>, %arg5: memref<256x1xf32, #tpu.memory_space<vmem>>, %arg6: memref<256x1xf32, #tpu.memory_space<vmem>>, %arg7: memref<1x1xf32, #tpu.memory_space<vmem>>, %arg8: memref<1x128xf32, #tpu.memory_space<vmem>>) attributes {dimension_semantics = [#tpu.dimension_semantics<parallel>], iteration_bounds = array<i64: 1>, scalar_prefetch = 0 : i64, scratch_operands = 0 : i64, tpu.core_type = #tpu.core_type<tc>, window_params = [{transform_indices = @transform_0, window_bounds = array<i64: 32, 128>}, {pipeline_mode = #tpu.pipeline_mode<synchronous>, transform_indices = @transform_1, window_bounds = array<i64: 256, 32>}, {pipeline_mode = #tpu.pipeline_mode<synchronous>, transform_indices = @transform_2, window_bounds = array<i64: 256, 1>}, {pipeline_mode = #tpu.pipeline_mode<synchronous>, transform_indices = @transform_3, window_bounds = array<i64: 256, 256>}, {pipeline_mode = #tpu.pipeline_mode<synchronous>, transform_indices = @transform_4, window_bounds = array<i64: 256, 1>}, {pipeline_mode = #tpu.pipeline_mode<synchronous>, transform_indices = @transform_5, window_bounds = array<i64: 256, 1>}, {pipeline_mode = #tpu.pipeline_mode<synchronous>, transform_indices = @transform_6, window_bounds = array<i64: 1, 1>}, {transform_indices = @transform_7, window_bounds = array<i64: 1, 128>}]} {
    %c0 = arith.constant 0 : index
    %c0_0 = arith.constant 0 : index
    %0 = vector.load %arg1[%c0, %c0_0] : memref<32x128xbf16, #tpu.memory_space<vmem>>, vector<32x128xbf16>
    %c0_1 = arith.constant 0 : index
    %c0_2 = arith.constant 0 : index
    %1 = vector.load %arg2[%c0_1, %c0_2] : memref<256x32xbf16, #tpu.memory_space<vmem>>, vector<256x32xbf16>
    %cst = arith.constant dense<0.000000e+00> : vector<256x128xf32>
    %2 = tpu.matmul %1, %0, %cst {dimension_numbers = #tpu.dot_dimension_numbers<[1], [0], [0], [1], [0, 0, 1, 1], [], []>} : vector<256x32xbf16>, vector<32x128xbf16>, vector<256x128xf32> -> vector<256x128xf32>
    %c0_3 = arith.constant 0 : index
    %c0_4 = arith.constant 0 : index
    %3 = vector.load %arg3[%c0_3, %c0_4] : memref<256x1xf32, #tpu.memory_space<vmem>>, vector<256x1xf32>
    %4 = vector.broadcast %3 : vector<256x1xf32> to vector<256x128xf32>
    %5 = arith.addf %2, %4 : vector<256x128xf32>
    %cst_5 = arith.constant 0.000000e+00 : f32
    %6 = vector.broadcast %cst_5 : f32 to vector<256x128xf32>
    %7 = arith.maximumf %5, %6 : vector<256x128xf32>
    %c0_6 = arith.constant 0 : index
    %c0_7 = arith.constant 0 : index
    %8 = vector.load %arg4[%c0_6, %c0_7] : memref<256x256xbf16, #tpu.memory_space<vmem>>, vector<256x256xbf16>
    %9 = arith.truncf %7 : vector<256x128xf32> to vector<256x128xbf16>
    %cst_8 = arith.constant dense<0.000000e+00> : vector<256x128xf32>
    %10 = tpu.matmul %8, %9, %cst_8 {dimension_numbers = #tpu.dot_dimension_numbers<[1], [0], [0], [1], [0, 0, 1, 1], [], []>} : vector<256x256xbf16>, vector<256x128xbf16>, vector<256x128xf32> -> vector<256x128xf32>
    %c0_9 = arith.constant 0 : index
    %c0_10 = arith.constant 0 : index
    %11 = vector.load %arg5[%c0_9, %c0_10] : memref<256x1xf32, #tpu.memory_space<vmem>>, vector<256x1xf32>
    %12 = vector.broadcast %11 : vector<256x1xf32> to vector<256x128xf32>
    %13 = arith.addf %10, %12 : vector<256x128xf32>
    %cst_11 = arith.constant 0.000000e+00 : f32
    %14 = vector.broadcast %cst_11 : f32 to vector<256x128xf32>
    %15 = arith.maximumf %13, %14 : vector<256x128xf32>
    %c0_12 = arith.constant 0 : index
    %c0_13 = arith.constant 0 : index
    %16 = vector.load %arg6[%c0_12, %c0_13] : memref<256x1xf32, #tpu.memory_space<vmem>>, vector<256x1xf32>
    %17 = vector.broadcast %16 : vector<256x1xf32> to vector<256x128xf32>
    %18 = arith.mulf %15, %17 : vector<256x128xf32>
    %cst_14 = arith.constant dense<0.000000e+00> : vector<128xf32>
    %19 = vector.multi_reduction <add>, %18, %cst_14 [0] : vector<256x128xf32> to vector<128xf32>
    %20 = vector.shape_cast %19 : vector<128xf32> to vector<1x128xf32>
    %c0_15 = arith.constant 0 : index
    %c0_16 = arith.constant 0 : index
    %21 = vector.load %arg7[%c0_15, %c0_16] : memref<1x1xf32, #tpu.memory_space<vmem>>, vector<1x1xf32>
    %22 = vector.broadcast %21 : vector<1x1xf32> to vector<1x128xf32>
    %23 = arith.addf %20, %22 : vector<1x128xf32>
    %c0_17 = arith.constant 0 : index
    %c0_18 = arith.constant 0 : index
    %24 = vector.load %arg8[%c0_17, %c0_18] : memref<1x128xf32, #tpu.memory_space<vmem>>, vector<1x128xf32>
    tpu.vector_store %arg8[%c0_17, %c0_18], %23 {strides = array<i32>} : memref<1x128xf32, #tpu.memory_space<vmem>>, vector<1x128xf32>,
    return
  }
  func.func @transform_0(%arg0: i32) -> (i32, i32) {
    %c0_i32 = arith.constant 0 : i32
    %c0_i32_0 = arith.constant 0 : i32
    return %c0_i32, %arg0 : i32, i32
  }
  func.func @transform_1(%arg0: i32) -> (i32, i32) {
    %c0_i32 = arith.constant 0 : i32
    %c0_i32_0 = arith.constant 0 : i32
    %c0_i32_1 = arith.constant 0 : i32
    return %c0_i32, %c0_i32_0 : i32, i32
  }
  func.func @transform_2(%arg0: i32) -> (i32, i32) {
    %c0_i32 = arith.constant 0 : i32
    %c0_i32_0 = arith.constant 0 : i32
    %c0_i32_1 = arith.constant 0 : i32
    return %c0_i32, %c0_i32_0 : i32, i32
  }
  func.func @transform_3(%arg0: i32) -> (i32, i32) {
    %c0_i32 = arith.constant 0 : i32
    %c0_i32_0 = arith.constant 0 : i32
    %c0_i32_1 = arith.constant 0 : i32
    return %c0_i32, %c0_i32_0 : i32, i32
  }
  func.func @transform_4(%arg0: i32) -> (i32, i32) {
    %c0_i32 = arith.constant 0 : i32
    %c0_i32_0 = arith.constant 0 : i32
    %c0_i32_1 = arith.constant 0 : i32
    return %c0_i32, %c0_i32_0 : i32, i32
  }
  func.func @transform_5(%arg0: i32) -> (i32, i32) {
    %c0_i32 = arith.constant 0 : i32
    %c0_i32_0 = arith.constant 0 : i32
    %c0_i32_1 = arith.constant 0 : i32
    return %c0_i32, %c0_i32_0 : i32, i32
  }
  func.func @transform_6(%arg0: i32) -> (i32, i32) {
    %c0_i32 = arith.constant 0 : i32
    %c0_i32_0 = arith.constant 0 : i32
    %c0_i32_1 = arith.constant 0 : i32
    return %c0_i32, %c0_i32_0 : i32, i32
  }
  func.func @transform_7(%arg0: i32) -> (i32, i32) {
    %c0_i32 = arith.constant 0 : i32
    %c0_i32_0 = arith.constant 0 : i32
    return %c0_i32, %arg0 : i32, i32
  }
}

</mosaic_0001>

<bundles_post_ra>
// kernel: tpu_custom_call.1
= control target key start
LH: loop header
LB: loop body
LE: loop exit
PB: predicated region body
PF: predicated region fallthrough
CT: control target
= control target key end

     0   :  { %s2600_s0 = inlined_call_operand.vmem [shape: bf16[32,128], index: 0, kind: input, shape index: {}]   ;;  %s2601_s1 = inlined_call_operand.vmem [shape: bf16[256,32], index: 1, kind: input, shape index: {}]   ;;  %s2602_s2 = inlined_call_operand.vmem [shape: f32[256,1], index: 2, kind: input, shape index: {}]   ;;  %s2603_s3 = inlined_call_operand.vmem [shape: bf16[256,256], index: 3, kind: input, shape index: {}]   ;;  %s2604_s4 = inlined_call_operand.vmem [shape: f32[256,1], index: 4, kind: input, shape index: {}]   ;;  %s2605_s5 = inlined_call_operand.vmem [shape: f32[256,1], index: 5, kind: input, shape index: {}]   ;;  %s2606_s6 = inlined_call_operand.<no memory space> [shape: f32[1,1], index: 6, kind: input, shape index: {}]   ;;  %s2607_s7 = inlined_call_operand.hbm [shape: f32[1,128], index: 7, kind: output, shape index: {}]  }
   0x1   :  { %v12_v0 = vstv %s2606_s6 }
   0x2   :  { %13 = vst [vmem:[#allocation2] sm:$0x1] %v12_v0 }
   0x3   :  { %v96_v1 = vld [vmem:[%s2602_s2 + $0xf0] sm:$0xff]  ;;  %v1812_v3 = vmov 0   ;;  %v1724_v4 = vld [vmem:[%s2600_s0 + $0x8] sm:$0xff]   ;;  %v97_v5 = vld [vmem:[%s2602_s2 + $0xf8] sm:$0xff]  ;;  %vm350_vm0 = vcmask 261120  }
   0x4   :  { %v80_v2 = vld [vmem:[%s2602_s2 + $0x70] sm:$0xff]  ;;  %1723 = vset.pattern.permute.xlu1 %v1812_v3  ;;  %1722 = vset.pattern.permute.xlu0 %v1812_v3  ;;  %v81_v6 = vld [vmem:[%s2602_s2 + $0x78] sm:$0xff]  ;;  %v1725_v7 = vld [vmem:[%s2600_s0] sm:$0xff]  }
   0x5   :  { %250 = vperm.xlu0 %1722, %v96_v1   ;;  %170 = vperm.xlu1 %1723, %v80_v2   ;;  %v1726_v8 = vld [vmem:[%s2601_s1] sm:$0xff]   ;;  %v95_v10 = vld [vmem:[%s2602_s2 + $0xe8] sm:$0xff]  ;;  %v1728_v12 = vld [vmem:[%s2601_s1 + $0x10] sm:$0xff]  }
   0x6   :  { %1668 = vmatprep.subr.bf16.mxu0 %v1724_v4  ;;  %v94_v9 = vld [vmem:[%s2602_s2 + $0xe0] sm:$0xff]  ;;  %1672 = vmatprep.mubr.msk.bf16.mxu0 %vm350_vm0, %v1726_v8  ;;  %v1727_v11 = vld [vmem:[%s2601_s1 + $0x8] sm:$0xff]   ;;  %v93_v15 = vld [vmem:[%s2602_s2 + $0xd8] sm:$0xff] }
   0x7   :  { %1669 = vmatpush3.bf16.msra.mxu0 %v1724_v4  ;;  %v79_v13 = vld [vmem:[%s2602_s2 + $0x68] sm:$0xff]  ;;  %v78_v14 = vld [vmem:[%s2602_s2 + $0x60] sm:$0xff]  ;;  %v92_v16 = vld [vmem:[%s2602_s2 + $0xd0] sm:$0xff] }
   0x8   :  { %1670 = vmatprep.subr.bf16.mxu0 %v1725_v7  ;;  %v1729_v17 = vld [vmem:[%s2601_s1 + $0x18] sm:$0xff]   ;;  %v1730_v18 = vld [vmem:[%s2601_s1 + $0x20] sm:$0xff]   ;;  %v76_v20 = vld [vmem:[%s2602_s2 + $0x50] sm:$0xff] }
   0x9   :  { %255 = vperm.xlu0 %1722, %v97_v5   ;;  %175 = vperm.xlu1 %1723, %v81_v6   ;;  %v77_v19 = vld [vmem:[%s2602_s2 + $0x58] sm:$0xff]  ;;  %v91_v21 = vld [vmem:[%s2602_s2 + $0xc8] sm:$0xff]  ;;  %v90_v22 = vld [vmem:[%s2602_s2 + $0xc0] sm:$0xff] }
   0xa   :  { %v1731_v23 = vld [vmem:[%s2601_s1 + $0x28] sm:$0xff]   ;;  %v1732_v24 = vld [vmem:[%s2601_s1 + $0x30] sm:$0xff]   ;;  %v74_v26 = vld [vmem:[%s2602_s2 + $0x40] sm:$0xff] }
   0xb   :  { %1671 = vmatpush3.bf16.msra.mxu0 %v1725_v7  ;;  %v75_v25 = vld [vmem:[%s2602_s2 + $0x48] sm:$0xff]  ;;  %v89_v27 = vld [vmem:[%s2602_s2 + $0xb8] sm:$0xff]  ;;  %v88_v28 = vld [vmem:[%s2602_s2 + $0xb0] sm:$0xff] }
   0xc   :  { %v1733_v29 = vld [vmem:[%s2601_s1 + $0x38] sm:$0xff]   ;;  %v1734_v30 = vld [vmem:[%s2601_s1 + $0x40] sm:$0xff]   ;;  %v72_v32 = vld [vmem:[%s2602_s2 + $0x30] sm:$0xff] }
   0xd   :  { %240 = vperm.xlu0 %1722, %v94_v9   ;;  %245 = vperm.xlu1 %1723, %v95_v10   ;;  %v73_v31 = vld [vmem:[%s2602_s2 + $0x38] sm:$0xff]  ;;  %v87_v33 = vld [vmem:[%s2602_s2 + $0xa8] sm:$0xff]  ;;  %v86_v34 = vld [vmem:[%s2602_s2 + $0xa0] sm:$0xff] }
   0xe   :  { %1673 = vmatmul.mubr.msk.bf16.vlgmr.msra.gmra.mxu0 %vm350_vm0, %v1727_v11  ;;  %v1735_v35 = vld [vmem:[%s2601_s1 + $0x48] sm:$0xff]   ;;  %v1736_v36 = vld [vmem:[%s2601_s1 + $0x50] sm:$0xff]   ;;  %v70_v38 = vld [vmem:[%s2602_s2 + $0x20] sm:$0xff] }
   0xf   :  { %1676 = vmatprep.mubr.msk.bf16.mxu0 %vm350_vm0, %v1728_v12  ;;  %v71_v37 = vld [vmem:[%s2602_s2 + $0x28] sm:$0xff]  ;;  %v85_v39 = vld [vmem:[%s2602_s2 + $0x98] sm:$0xff]  ;;  %v84_v40 = vld [vmem:[%s2602_s2 + $0x90] sm:$0xff] }
  0x10   :  { %v1737_v41 = vld [vmem:[%s2601_s1 + $0x58] sm:$0xff]   ;;  %v1738_v42 = vld [vmem:[%s2601_s1 + $0x60] sm:$0xff]   ;;  %v68_v44 = vld [vmem:[%s2602_s2 + $0x10] sm:$0xff] }
  0x11   :  { %165 = vperm.xlu1 %1723, %v79_v13   ;;  %160 = vperm.xlu0 %1722, %v78_v14   ;;  %v69_v43 = vld [vmem:[%s2602_s2 + $0x18] sm:$0xff]  ;;  %v83_v45 = vld [vmem:[%s2602_s2 + $0x88] sm:$0xff]  ;;  %v82_v46 = vld [vmem:[%s2602_s2 + $0x80] sm:$0xff] }
  0x12   :  { %v1739_v47 = vld [vmem:[%s2601_s1 + $0x68] sm:$0xff]   ;;  %v1740_v48 = vld [vmem:[%s2601_s1 + $0x70] sm:$0xff]   ;;  %v66_v50 = vld [vmem:[%s2602_s2] sm:$0xff] }
  0x13   :  { %v67_v49 = vld [vmem:[%s2602_s2 + $0x8] sm:$0xff] }
  0x15   :  { %235 = vperm.xlu1 %1723, %v93_v15   ;;  %230 = vperm.xlu0 %1722, %v92_v16  }
  0x16   :  { %1677 = vmatmul.mubr.msk.bf16.gmra.mxu0 %vm350_vm0, %v1729_v17 }
  0x17   :  { %1680 = vmatprep.mubr.msk.bf16.mxu0 %vm350_vm0, %v1730_v18 }
  0x19   :  { %155 = vperm.xlu1 %1723, %v77_v19   ;;  %150 = vperm.xlu0 %1722, %v76_v20  }
  0x1d   :  { %225 = vperm.xlu1 %1723, %v91_v21   ;;  %220 = vperm.xlu0 %1722, %v90_v22  }
  0x1e   :  { %1681 = vmatmul.mubr.msk.bf16.gmra.mxu0 %vm350_vm0, %v1731_v23 }
  0x1f   :  { %1684 = vmatprep.mubr.msk.bf16.mxu0 %vm350_vm0, %v1732_v24 }
  0x21   :  { %145 = vperm.xlu1 %1723, %v75_v25   ;;  %140 = vperm.xlu0 %1722, %v74_v26  }
  0x25   :  { %215 = vperm.xlu1 %1723, %v89_v27   ;;  %210 = vperm.xlu0 %1722, %v88_v28  }
  0x26   :  { %1685 = vmatmul.mubr.msk.bf16.gmra.mxu0 %vm350_vm0, %v1733_v29 }
  0x27   :  { %1688 = vmatprep.mubr.msk.bf16.mxu0 %vm350_vm0, %v1734_v30 }
  0x29   :  { %135 = vperm.xlu1 %1723, %v73_v31   ;;  %130 = vperm.xlu0 %1722, %v72_v32  }
  0x2d   :  { %205 = vperm.xlu1 %1723, %v87_v33   ;;  %200 = vperm.xlu0 %1722, %v86_v34  }
  0x2e   :  { %1689 = vmatmul.mubr.msk.bf16.gmra.mxu0 %vm350_vm0, %v1735_v35 }
  0x2f   :  { %1692 = vmatprep.mubr.msk.bf16.mxu0 %vm350_vm0, %v1736_v36 }
  0x31   :  { %125 = vperm.xlu1 %1723, %v71_v37   ;;  %120 = vperm.xlu0 %1722, %v70_v38  }
  0x35   :  { %195 = vperm.xlu1 %1723, %v85_v39   ;;  %190 = vperm.xlu0 %1722, %v84_v40  }
  0x36   :  { %1693 = vmatmul.mubr.msk.bf16.gmra.mxu0 %vm350_vm0, %v1737_v41 }
  0x37   :  { %1696 = vmatprep.mubr.msk.bf16.mxu0 %vm350_vm0, %v1738_v42 }
  0x39   :  { %115 = vperm.xlu1 %1723, %v69_v43   ;;  %110 = vperm.xlu0 %1722, %v68_v44  }
  0x3d   :  { %185 = vperm.xlu1 %1723, %v83_v45   ;;  %180 = vperm.xlu0 %1722, %v82_v46  }
  0x3e   :  { %1697 = vmatmul.mubr.msk.bf16.gmra.mxu0 %vm350_vm0, %v1739_v47 }
  0x3f   :  { %1700 = vmatprep.mubr.msk.bf16.mxu0 %vm350_vm0, %v1740_v48 }
  0x40   :  { %14 = vsyncpa [#allocation4], 0  ;;  %v641_v51 = vld [vmem:[%s2604_s4 + $0x8] sm:$0xff]  ;;  %v640_v52 = vld [vmem:[%s2604_s4] sm:$0xff] }
  0x41   :  { %105 = vperm.xlu1 %1723, %v67_v49   ;;  %100 = vperm.xlu0 %1722, %v66_v50   ;;  %v1741_v53 = vld [vmem:[%s2601_s1 + $0x78] sm:$0xff]   ;;  %v642_v55 = vld [vmem:[%s2604_s4 + $0x10] sm:$0xff]  ;;  %v645_v56 = vld [vmem:[%s2604_s4 + $0x28] sm:$0xff] }
  0x42   :  { %v643_v54 = vld [vmem:[%s2604_s4 + $0x18] sm:$0xff]  ;;  %v644_v57 = vld [vmem:[%s2604_s4 + $0x20] sm:$0xff]  ;;  %v646_v59 = vld [vmem:[%s2604_s4 + $0x30] sm:$0xff] }
  0x43   :  { %v647_v58 = vld [vmem:[%s2604_s4 + $0x38] sm:$0xff]  ;;  %v649_v60 = vld [vmem:[%s2604_s4 + $0x48] sm:$0xff]  ;;  %v648_v61 = vld [vmem:[%s2604_s4 + $0x40] sm:$0xff] }
  0x44   :  { %v651_v62 = vld [vmem:[%s2604_s4 + $0x58] sm:$0xff]  ;;  %v650_v63 = vld [vmem:[%s2604_s4 + $0x50] sm:$0xff]  ;;  %v653_v0 = vld [vmem:[%s2604_s4 + $0x68] sm:$0xff] }
  0x45   :  { %679 = vperm.xlu1 %1723, %v641_v51   ;;  %674 = vperm.xlu0 %1722, %v640_v52   ;;  %v652_v1 = vld [vmem:[%s2604_s4 + $0x60] sm:$0xff]  ;;  %v655_v2 = vld [vmem:[%s2604_s4 + $0x78] sm:$0xff]  ;;  %v654_v3 = vld [vmem:[%s2604_s4 + $0x70] sm:$0xff] }
  0x46   :  { %1701 = vmatmul.mubr.msk.bf16.gmra.mxu0 %vm350_vm0, %v1741_v53  ;;  %v657_v4 = vld [vmem:[%s2604_s4 + $0x88] sm:$0xff]  ;;  %v656_v5 = vld [vmem:[%s2604_s4 + $0x80] sm:$0xff]  ;;  %v659_v6 = vld [vmem:[%s2604_s4 + $0x98] sm:$0xff] }
  0x47   :  { %v658_v7 = vld [vmem:[%s2604_s4 + $0x90] sm:$0xff]  ;;  %v661_v8 = vld [vmem:[%s2604_s4 + $0xa8] sm:$0xff]  ;;  %v660_v9 = vld [vmem:[%s2604_s4 + $0xa0] sm:$0xff] }
  0x48   :  { %v663_v10 = vld [vmem:[%s2604_s4 + $0xb8] sm:$0xff]  ;;  %v662_v11 = vld [vmem:[%s2604_s4 + $0xb0] sm:$0xff]  ;;  %v665_v12 = vld [vmem:[%s2604_s4 + $0xc8] sm:$0xff] }
  0x49   :  { %689 = vperm.xlu1 %1723, %v643_v54   ;;  %684 = vperm.xlu0 %1722, %v642_v55   ;;  %v664_v13 = vld [vmem:[%s2604_s4 + $0xc0] sm:$0xff]  ;;  %v667_v14 = vld [vmem:[%s2604_s4 + $0xd8] sm:$0xff]  ;;  %v666_v15 = vld [vmem:[%s2604_s4 + $0xd0] sm:$0xff] }
  0x4a   :  { %v669_v16 = vld [vmem:[%s2604_s4 + $0xe8] sm:$0xff]  ;;  %v668_v17 = vld [vmem:[%s2604_s4 + $0xe0] sm:$0xff]  ;;  %v1188_v22 = vld [vmem:[%s2605_s5 + $0x18] sm:$0xff] }
  0x4b   :  { %v1186_v18 = vld [vmem:[%s2605_s5 + $0x8] sm:$0xff]  ;;  %v1185_v19 = vld [vmem:[%s2605_s5] sm:$0xff]  ;;  %v1187_v23 = vld [vmem:[%s2605_s5 + $0x10] sm:$0xff] }
  0x4c   :  { %v1190_v26 = vld [vmem:[%s2605_s5 + $0x28] sm:$0xff]  ;;  %v1189_v27 = vld [vmem:[%s2605_s5 + $0x20] sm:$0xff]  ;;  %v1192_v30 = vld [vmem:[%s2605_s5 + $0x38] sm:$0xff] }
  0x4d   :  { %699 = vperm.xlu1 %1723, %v645_v56   ;;  %694 = vperm.xlu0 %1722, %v644_v57   ;;  %v1191_v31 = vld [vmem:[%s2605_s5 + $0x30] sm:$0xff]  ;;  %v1194_v34 = vld [vmem:[%s2605_s5 + $0x48] sm:$0xff]  ;;  %v1193_v35 = vld [vmem:[%s2605_s5 + $0x40] sm:$0xff] }
  0x4e   :  { %v1196_v37 = vld [vmem:[%s2605_s5 + $0x58] sm:$0xff]  ;;  %v1195_v38 = vld [vmem:[%s2605_s5 + $0x50] sm:$0xff]  ;;  %v1198_v40 = vld [vmem:[%s2605_s5 + $0x68] sm:$0xff] }
  0x4f   :  { %v1197_v41 = vld [vmem:[%s2605_s5 + $0x60] sm:$0xff]  ;;  %v1200_v44 = vld [vmem:[%s2605_s5 + $0x78] sm:$0xff]  ;;  %v1199_v45 = vld [vmem:[%s2605_s5 + $0x70] sm:$0xff] }
  0x50   :  { %v1202_v47 = vld [vmem:[%s2605_s5 + $0x88] sm:$0xff]  ;;  %v1201_v48 = vld [vmem:[%s2605_s5 + $0x80] sm:$0xff]  ;;  %v1204_v50 = vld [vmem:[%s2605_s5 + $0x98] sm:$0xff] }
  0x51   :  { %709 = vperm.xlu1 %1723, %v647_v58   ;;  %704 = vperm.xlu0 %1722, %v646_v59   ;;  %v1203_v51 = vld [vmem:[%s2605_s5 + $0x90] sm:$0xff]  ;;  %v1206_v54 = vld [vmem:[%s2605_s5 + $0xa8] sm:$0xff]  ;;  %v1205_v55 = vld [vmem:[%s2605_s5 + $0xa0] sm:$0xff] }
  0x52   :  { %v1208_v57 = vld [vmem:[%s2605_s5 + $0xb8] sm:$0xff]  ;;  %v1207_v58 = vld [vmem:[%s2605_s5 + $0xb0] sm:$0xff] }
  0x55   :  { %719 = vperm.xlu1 %1723, %v649_v60   ;;  %714 = vperm.xlu0 %1722, %v648_v61   ;;  %v1210_v60 = vld [vmem:[%s2605_s5 + $0xc8] sm:$0xff]  ;;  %v1209_v61 = vld [vmem:[%s2605_s5 + $0xc0] sm:$0xff] }
  0x59   :  { %729 = vperm.xlu1 %1723, %v651_v62   ;;  %724 = vperm.xlu0 %1722, %v650_v63   ;;  %v1744_v63 = vld [vmem:[%s2603_s3 + $0x54] ss:$8 sps:$4 sm:$0xff]  }
  0x5a   :  { %1064 = vmatprep.mubr.bf16.mxu1 %v1744_v63 }
  0x5d   :  { %739 = vperm.xlu1 %1723, %v653_v0   ;;  %734 = vperm.xlu0 %1722, %v652_v1   ;;  %v1747_v0 = vld [vmem:[%s2603_s3 + $0x4] ss:$8 sps:$4 sm:$0xff]  }
  0x5e   :  { %1024 = vmatprep.mubr.bf16.mxu0 %v1747_v0 }
  0x61   :  { %749 = vperm.xlu1 %1723, %v655_v2   ;;  %744 = vperm.xlu0 %1722, %v654_v3   ;;  %v1212_v2 = vld [vmem:[%s2605_s5 + $0xd8] sm:$0xff]  ;;  %v1211_v3 = vld [vmem:[%s2605_s5 + $0xd0] sm:$0xff] }
  0x65   :  { %759 = vperm.xlu1 %1723, %v657_v4   ;;  %754 = vperm.xlu0 %1722, %v656_v5   ;;  %v1213_v5 = vld [vmem:[%s2605_s5 + $0xe0] sm:$0xff] }
  0x69   :  { %769 = vperm.xlu1 %1723, %v659_v6   ;;  %764 = vperm.xlu0 %1722, %v658_v7   ;;  %v670_v6 = vld [vmem:[%s2604_s4 + $0xf0] sm:$0xff] }
  0x6d   :  { %779 = vperm.xlu1 %1723, %v661_v8   ;;  %774 = vperm.xlu0 %1722, %v660_v9   ;;  %v1214_v8 = vld [vmem:[%s2605_s5 + $0xe8] sm:$0xff]  ;;  %v671_v9 = vld [vmem:[%s2604_s4 + $0xf8] sm:$0xff] }
  0x71   :  { %789 = vperm.xlu1 %1723, %v663_v10   ;;  %784 = vperm.xlu0 %1722, %v662_v11  }
  0x75   :  { %799 = vperm.xlu1 %1723, %v665_v12   ;;  %794 = vperm.xlu0 %1722, %v664_v13   ;;  %v1216_v12 = vld [vmem:[%s2605_s5 + $0xf8] sm:$0xff]  ;;  %v1215_v13 = vld [vmem:[%s2605_s5 + $0xf0] sm:$0xff] }
  0x79   :  { %809 = vperm.xlu1 %1723, %v667_v14   ;;  %804 = vperm.xlu0 %1722, %v666_v15   ;;  %v1446_v15 = vld [vmem:[#allocation2] sm:$0x1] }
  0x7d   :  { %819 = vperm.xlu1 %1723, %v669_v16   ;;  %814 = vperm.xlu0 %1722, %v668_v17  }
  0x80   :  { %v2119_v20 = vpop.permute.xlu0 %250  ;;  %v2121_v21 = vpop.permute.xlu1 %170 }
  0x81   :  { %1224 = vperm.xlu1 %1723, %v1186_v18   ;;  %1219 = vperm.xlu0 %1722, %v1185_v19  }
  0x84   :  { %v2129_v24 = vpop.permute.xlu0 %255  ;;  %v2131_v25 = vpop.permute.xlu1 %175 }
  0x85   :  { %1234 = vperm.xlu1 %1723, %v1188_v22   ;;  %1229 = vperm.xlu0 %1722, %v1187_v23  }
  0x88   :  { %v2139_v28 = vpop.permute.xlu0 %240  ;;  %v2141_v29 = vpop.permute.xlu1 %245 }
  0x89   :  { %1244 = vperm.xlu1 %1723, %v1190_v26   ;;  %1239 = vperm.xlu0 %1722, %v1189_v27  }
  0x8c   :  { %v2149_v32 = vpop.permute.xlu0 %160  ;;  %v2151_v33 = vpop.permute.xlu1 %165 }
  0x8d   :  { %1254 = vperm.xlu1 %1723, %v1192_v30   ;;  %1249 = vperm.xlu0 %1722, %v1191_v31  }
  0x90   :  { %v2159_v36 = vpop.permute.xlu0 %230  ;;  %v2167_v39 = vpop.permute.xlu1 %235 }
  0x91   :  { %1264 = vperm.xlu1 %1723, %v1194_v34   ;;  %1259 = vperm.xlu0 %1722, %v1193_v35  }
  0x94   :  { %v2175_v42 = vpop.permute.xlu0 %150  ;;  %v2177_v43 = vpop.permute.xlu1 %155 }
  0x95   :  { %1274 = vperm.xlu1 %1723, %v1196_v37   ;;  %1269 = vperm.xlu0 %1722, %v1195_v38  }
  0x98   :  { %v2185_v46 = vpop.permute.xlu0 %220  ;;  %v2193_v49 = vpop.permute.xlu1 %225 }
  0x99   :  { %1284 = vperm.xlu1 %1723, %v1198_v40   ;;  %1279 = vperm.xlu0 %1722, %v1197_v41  }
  0x9c   :  { %v2201_v52 = vpop.permute.xlu0 %140  ;;  %v2203_v53 = vpop.permute.xlu1 %145 }
  0x9d   :  { %1294 = vperm.xlu1 %1723, %v1200_v44   ;;  %1289 = vperm.xlu0 %1722, %v1199_v45  }
  0xa0   :  { %v2211_v56 = vpop.permute.xlu0 %210  ;;  %v2219_v59 = vpop.permute.xlu1 %215 }
  0xa1   :  { %1304 = vperm.xlu1 %1723, %v1202_v47   ;;  %1299 = vperm.xlu0 %1722, %v1201_v48  }
  0xa4   :  { %v131_v62 = vpop.permute.xlu0 %130  ;;  %v136_v1 = vpop.permute.xlu1 %135 }
  0xa5   :  { %1314 = vperm.xlu1 %1723, %v1204_v50   ;;  %1309 = vperm.xlu0 %1722, %v1203_v51  }
  0xa8   :  { %v2239_v4 = vpop.permute.xlu0 %200  ;;  %v2247_v7 = vpop.permute.xlu1 %205 }
  0xa9   :  { %1324 = vperm.xlu1 %1723, %v1206_v54   ;;  %1319 = vperm.xlu0 %1722, %v1205_v55  }
  0xac   :  { %v121_v10 = vpop.permute.xlu0 %120  ;;  %v126_v11 = vpop.permute.xlu1 %125 }
  0xad   :  { %1334 = vperm.xlu1 %1723, %v1208_v57   ;;  %1329 = vperm.xlu0 %1722, %v1207_v58  }
  0xb0   :  { %v2261_v14 = vpop.permute.xlu0 %190  ;;  %v2263_v16 = vpop.permute.xlu1 %195 }
  0xb1   :  { %1344 = vperm.xlu1 %1723, %v1210_v60   ;;  %1339 = vperm.xlu0 %1722, %v1209_v61  }
  0xb4   :  { %v111_v17 = vpop.permute.xlu0 %110  ;;  %v116_v18 = vpop.permute.xlu1 %115 }
  0xb5   :  { %1354 = vperm.xlu1 %1723, %v1212_v2   ;;  %1349 = vperm.xlu0 %1722, %v1211_v3  }
  0xb8   :  { %v2265_v19 = vpop.permute.xlu0 %180  ;;  %v2267_v23 = vpop.permute.xlu1 %185 }
  0xb9   :  { %1359 = vperm.xlu1 %1723, %v1213_v5   ;;  %824 = vperm.xlu0 %1722, %v670_v6  }
  0xbc   :  { %v101_v30 = vpop.permute.xlu0 %100  ;;  %v106_v37 = vpop.permute.xlu1 %105 }
  0xbd   :  { %1364 = vperm.xlu1 %1723, %v1214_v8   ;;  %829 = vperm.xlu0 %1722, %v671_v9  }
  0xc1   :  { %1374 = vperm.xlu1 %1723, %v1216_v12   ;;  %1369 = vperm.xlu0 %1722, %v1215_v13  }
  0xc5   :  { %1449 = vperm.xlu0 %1722, %v1446_v15  }
  0xce   :  { %v1674_v22 = vpop.f32.mrf.mxu0 }
  0xcf   :  { %v442_v27 = vadd.f32 %v1674_v22, %v111_v17 }
  0xd0   :  { %v433_v26 = vpop.f32.mrf.mxu0 }
  0xd1   :  { %v434_v34 = vadd.f32 %v433_v26, %v101_v30  ;;  %v562_v40 = vmax.f32 %v442_v27, 0.0 }
  0xd2   :  { %v1675_v31 = vpop.f32.mrf.mxu0 }
  0xd3   :  { %v445_v35 = vadd.f32 %v1675_v31, %v116_v18  ;;  %v560_v47 = vmax.f32 %v434_v34, 0.0 }
  0xd4   :  { %v436_v38 = vpop.f32.mrf.mxu0 }
  0xd5   :  { %v563_v41 = vmax.f32 %v445_v35, 0.0  ;;  %v437_v44 = vadd.f32 %v436_v38, %v106_v37 }
  0xd6   :  { %v1678_v45 = vpop.f32.mrf.mxu0 }
  0xd7   :  { %v2269_v48 = vpack.c.bf16 %v563_v41, %v562_v40  ;;  %v561_v50 = vmax.f32 %v437_v44, 0.0  ;;  %v458_v55 = vadd.f32 %v1678_v45, %v131_v62 }
  0xd8   :  { %v449_v51 = vpop.f32.mrf.mxu0 }
  0xd9   :  { %v2271_v54 = vpack.c.bf16 %v561_v50, %v560_v47  ;;  %v450_v58 = vadd.f32 %v449_v51, %v121_v10  ;;  %v566_v63 = vmax.f32 %v458_v55, 0.0 }
  0xda   :  { %v1679_v57 = vpop.f32.mrf.mxu0 }
  0xdb   :  { %v461_v60 = vadd.f32 %v1679_v57, %v136_v1  ;;  %v564_v5 = vmax.f32 %v450_v58, 0.0 }
  0xdc   :  { %v452_v61 = vpop.f32.mrf.mxu0 }
  0xdd   :  { %v567_v0 = vmax.f32 %v461_v60, 0.0  ;;  %v453_v2 = vadd.f32 %v452_v61, %v126_v11 }
  0xde   :  { %v1682_v3 = vpop.f32.mrf.mxu0 }
  0xdf   :  { %v2273_v6 = vpack.c.bf16 %v567_v0, %v566_v63  ;;  %v565_v8 = vmax.f32 %v453_v2, 0.0 }
  0xe0   :  { %v2275_v9 = vpop.f32.mrf.mxu0 }
  0xe1   :  { %v2277_v12 = vpack.c.bf16 %v565_v8, %v564_v5 }
  0xe2   :  { %v1683_v13 = vpop.f32.mrf.mxu0 }
  0xe4   :  { %v468_v15 = vpop.f32.mrf.mxu0 }
  0xe6   :  { %v1686_v17 = vpop.f32.mrf.mxu0 }
  0xe7   :  { %v490_v50 = vadd.f32 %v1686_v17, %v2121_v21 }
  0xe8   :  { %v481_v62 = vpop.f32.mrf.mxu0 }
  0xe9   :  { %v574_v5 = vmax.f32 %v490_v50, 0.0 }
  0xea   :  { %v1687_v18 = vpop.f32.mrf.mxu0 }
  0xeb   :  { %v493_v44 = vadd.f32 %v1687_v18, %v2131_v25 }
  0xec   :  { %v484_v10 = vpop.f32.mrf.mxu0 }
  0xed   :  { %v575_v58 = vmax.f32 %v493_v44, 0.0  ;;  %v485_v60 = vadd.f32 %v484_v10, %v2151_v33 }
  0xee   :  { %v2279_v1 = vpop.f32.mrf.mxu0 }
  0xef   :  { %v631_v18 = vpack.c.bf16 %v575_v58, %v574_v5  ;;  %v1758_v58 = vld [vmem:[%s2603_s3 + $0x20] ss:$8 sps:$4 sm:$0xff]   ;;  %v1768_v5 = vld [vmem:[%s2603_s3 + $0x94] ss:$8 sps:$4 sm:$0xff]  }
  0xf0   :  { %v2281_v22 = vpop.f32.mrf.mxu0 }
  0xf2   :  { %v2283_v11 = vpop.f32.mrf.mxu0 }
  0xf4   :  { %v2285_v26 = vpop.f32.mrf.mxu0 }
  0xf6   :  { %v1694_v27 = vpop.f32.mrf.mxu0 }
  0xf8   :  { %v2287_v30 = vpop.f32.mrf.mxu0 }
  0xfa   :  { %v1695_v31 = vpop.f32.mrf.mxu0 }
  0xfc   :  { %v516_v34 = vpop.f32.mrf.mxu0 }
  0xfe   :  { %v1698_v35 = vpop.f32.mrf.mxu0 }
  0xff   :  { %v538_v21 = vadd.f32 %v1698_v35, %v2159_v36  ;;  %v525_v35 = vadd.f32 %v1695_v31, %v2219_v59 }
 0x100   :  { %v529_v37 = vpop.f32.mrf.mxu0 }
 0x101   :  { %v530_v36 = vadd.f32 %v529_v37, %v2185_v46 }
 0x102   :  { %v1699_v38 = vpop.f32.mrf.mxu0 }
 0x103   :  { %v541_v63 = vadd.f32 %v1699_v38, %v2167_v39 }
 0x104   :  { %v532_v40 = vpop.f32.mrf.mxu0 }
 0x105   :  { %v587_v33 = vmax.f32 %v541_v63, 0.0  ;;  %v533_v10 = vadd.f32 %v532_v40, %v2193_v49  ;;  %v1762_v63 = vld [vmem:[%s2603_s3 + $0x84] ss:$8 sps:$4 sm:$0xff]  }
 0x106   :  { %v1702_v41 = vpop.f32.mrf.mxu0 }
 0x107   :  { %v554_v47 = vadd.f32 %v1702_v41, %v2119_v20  ;;  %v482_v20 = vadd.f32 %v481_v62, %v2149_v32  ;;  %v573_v41 = vmax.f32 %v485_v60, 0.0  ;;  %v586_v32 = vmax.f32 %v538_v21, 0.0  ;;  %v1759_v60 = vld [vmem:[%s2603_s3 + $0x70] ss:$8 sps:$4 sm:$0xff]  }
 0x108   :  { %v545_v45 = vpop.f32.mrf.mxu0  ;;  %v585_v40 = vmax.f32 %v533_v10, 0.0  ;;  %v1771_v21 = vld [vmem:[%s2603_s3 + $0x90] ss:$8 sps:$4 sm:$0xff]  }
 0x109   :  { %v546_v55 = vadd.f32 %v545_v45, %v2139_v28  ;;  %v590_v0 = vmax.f32 %v554_v47, 0.0  ;;  %v572_v38 = vmax.f32 %v482_v20, 0.0  ;;  %v637_v49 = vpack.c.bf16 %v587_v33, %v586_v32  ;;  %v1770_v20 = vld [vmem:[%s2603_s3 + $0x40] ss:$8 sps:$4 sm:$0xff]   ;;  %v1781_v33 = vld [vmem:[%s2603_s3 + $0xd4] ss:$8 sps:$4 sm:$0xff]  }
 0x10a   :  { %v1703_v51 = vpop.f32.mrf.mxu0  ;;  %v584_v45 = vmax.f32 %v530_v36, 0.0  ;;  %v583_v47 = vmax.f32 %v525_v35, 0.0  ;;  %v1783_v10 = vld [vmem:[%s2603_s3 + $0xd0] ss:$8 sps:$4 sm:$0xff]   ;;  %v2417_v36 = vpop.permute.xlu0 %674 }
 0x10b   :  { %v557_v57 = vadd.f32 %v1703_v51, %v2129_v24  ;;  %v588_v8 = vmax.f32 %v546_v55, 0.0  ;;  %v477_v24 = vadd.f32 %v1683_v13, %v2177_v43  ;;  %v469_v43 = vadd.f32 %v468_v15, %v2203_v53  ;;  %v1789_v32 = vld [vmem:[%s2603_s3 + $0xf0] ss:$8 sps:$4 sm:$0xff]  }
 0x10c   :  { %v548_v61 = vpop.f32.mrf.mxu0  ;;  %v630_v13 = vpack.c.bf16 %v573_v41, %v572_v38  ;;  %v517_v53 = vadd.f32 %v516_v34, %v2247_v7  ;;  %v636_v15 = vpack.c.bf16 %v585_v40, %v584_v45  ;;  %v506_v7 = vadd.f32 %v2279_v1, %v2261_v14  ;;  %v1780_v41 = vld [vmem:[%s2603_s3 + $0xc0] ss:$8 sps:$4 sm:$0xff]   ;;  %v1787_v38 = vld [vmem:[%s2603_s3 + $0xf4] ss:$8 sps:$4 sm:$0xff]  }
 0x10d   :  { %v591_v2 = vmax.f32 %v557_v57, 0.0  ;;  %v549_v25 = vadd.f32 %v548_v61, %v2141_v29  ;;  %v474_v29 = vadd.f32 %v1682_v3, %v2175_v42  ;;  %v571_v62 = vmax.f32 %v477_v24, 0.0  ;;  %v1756_v57 = vld [vmem:[%s2603_s3 + $0x74] ss:$8 sps:$4 sm:$0xff]   ;;  %v1777_v24 = vld [vmem:[%s2603_s3 + $0xb0] ss:$8 sps:$4 sm:$0xff]  }
 0x10e   :  { %v466_v42 = vadd.f32 %v2275_v9, %v2201_v52  ;;  %v522_v3 = vadd.f32 %v1694_v27, %v2211_v56  ;;  %v569_v37 = vmax.f32 %v469_v43, 0.0  ;;  %v514_v52 = vadd.f32 %v2287_v30, %v2239_v4  ;;  %v1760_v61 = vld [vmem:[%s2603_s3 + $0x34] ss:$8 sps:$4 sm:$0xff]   ;;  %v2419_v43 = vpop.permute.xlu0 %684 }
 0x10f   :  { %v639_v17 = vpack.c.bf16 %v591_v2, %v590_v0  ;;  %v589_v28 = vmax.f32 %v549_v25, 0.0  ;;  %v570_v44 = vmax.f32 %v474_v29, 0.0  ;;  %v509_v56 = vadd.f32 %v2283_v11, %v2263_v16  ;;  %v1764_v0 = vld [vmem:[%s2603_s3 + $0x30] ss:$8 sps:$4 sm:$0xff]   ;;  %v1765_v2 = vld [vmem:[%s2603_s3 + $0x80] ss:$8 sps:$4 sm:$0xff]  }
 0x110   :  { %v568_v59 = vmax.f32 %v466_v42, 0.0  ;;  %v582_v31 = vmax.f32 %v522_v3, 0.0  ;;  %v581_v50 = vmax.f32 %v517_v53, 0.0  ;;  %v580_v34 = vmax.f32 %v514_v52, 0.0  ;;  %v1766_v25 = vld [vmem:[%s2603_s3 + $0x44] ss:$8 sps:$4 sm:$0xff]  }
 0x111   :  { %v638_v39 = vpack.c.bf16 %v589_v28, %v588_v8  ;;  %1556 = vmatprep.subr.bf16.mxu0 %v639_v17  ;;  %1704 = vmatprep.subr.bf16.mxu1 %v639_v17  ;;  %v629_v46 = vpack.c.bf16 %v571_v62, %v570_v44  ;;  %v579_v51 = vmax.f32 %v509_v56, 0.0  ;;  %v501_v4 = vadd.f32 %v2285_v26, %v2267_v23  ;;  %v1754_v26 = vld [vmem:[%s2603_s3 + $0x24] ss:$8 sps:$4 sm:$0xff]   ;;  %v1774_v17 = vld [vmem:[%s2603_s3 + $0xa0] ss:$8 sps:$4 sm:$0xff]   ;;  %v680_v62 = vpop.permute.xlu1 %679 }
 0x112   :  { %1557 = vmatpush3.bf16.msra.mxu0 %v631_v18  ;;  %1712 = vmatpush3.bf16.msra.mxu1 %v631_v18  ;;  %v628_v9 = vpack.c.bf16 %v569_v37, %v568_v59  ;;  %v635_v27 = vpack.c.bf16 %v583_v47, %v582_v31  ;;  %v634_v30 = vpack.c.bf16 %v581_v50, %v580_v34  ;;  %v578_v16 = vmax.f32 %v506_v7, 0.0  ;;  %v1772_v8 = vld [vmem:[%s2603_s3 + $0xa4] ss:$8 sps:$4 sm:$0xff]   ;;  %v1775_v28 = vld [vmem:[%s2603_s3 + $0xb4] ss:$8 sps:$4 sm:$0xff]   ;;  %v2423_v35 = vpop.permute.xlu0 %694 }
 0x113   :  { %1558 = vmatprep.subr.bf16.mxu0 %v638_v39  ;;  %1705 = vmatprep.subr.bf16.mxu1 %v638_v39  ;;  %v498_v11 = vadd.f32 %v2281_v22, %v2265_v19  ;;  %v577_v14 = vmax.f32 %v501_v4, 0.0  ;;  %v1742_v19 = vld [vmem:[%s2603_s3 + $0x50] ss:$8 sps:$4 sm:$0xff]   ;;  %v1778_v18 = vld [vmem:[%s2603_s3 + $0xc4] ss:$8 sps:$4 sm:$0xff]  }
 0x114   :  { %v633_v55 = vpack.c.bf16 %v579_v51, %v578_v16  ;;  %v1752_v22 = vld [vmem:[%s2603_s3 + $0x10] ss:$8 sps:$4 sm:$0xff]   ;;  %v1784_v39 = vld [vmem:[%s2603_s3 + $0xe4] ss:$8 sps:$4 sm:$0xff]   ;;  %v1786_v29 = vld [vmem:[%s2603_s3 + $0xe0] ss:$8 sps:$4 sm:$0xff]  }
 0x115   :  { %v576_v1 = vmax.f32 %v498_v11, 0.0 }
 0x116   :  { %1559 = vmatpush3.bf16.msra.mxu0 %v630_v13  ;;  %1713 = vmatpush3.bf16.msra.mxu1 %v630_v13  ;;  %v2421_v13 = vpop.permute.xlu1 %689  ;;  %v2427_v40 = vpop.permute.xlu0 %704 }
 0x117   :  { %1560 = vmatprep.subr.bf16.mxu0 %v637_v49  ;;  %1706 = vmatprep.subr.bf16.mxu1 %v637_v49  ;;  %v632_v23 = vpack.c.bf16 %v577_v14, %v576_v1 }
 0x11a   :  { %1561 = vmatpush3.bf16.msra.mxu0 %v629_v46  ;;  %1714 = vmatpush3.bf16.msra.mxu1 %v629_v46  ;;  %v2425_v49 = vpop.permute.xlu1 %699  ;;  %v2431_v42 = vpop.permute.xlu0 %714 }
 0x11b   :  { %1562 = vmatprep.subr.bf16.mxu0 %v636_v15  ;;  %1707 = vmatprep.subr.bf16.mxu1 %v636_v15 }
 0x11e   :  { %1563 = vmatpush3.bf16.msra.mxu0 %v628_v9  ;;  %1715 = vmatpush3.bf16.msra.mxu1 %v628_v9  ;;  %v2429_v44 = vpop.permute.xlu1 %709  ;;  %v2435_v45 = vpop.permute.xlu0 %724 }
 0x11f   :  { %1564 = vmatprep.subr.bf16.mxu0 %v635_v27  ;;  %1708 = vmatprep.subr.bf16.mxu1 %v635_v27 }
 0x122   :  { %1565 = vmatpush3.bf16.msra.mxu0 %v2273_v6  ;;  %1716 = vmatpush3.bf16.msra.mxu1 %v2273_v6  ;;  %v1745_v6 = vld [vmem:[%s2603_s3] ss:$8 sps:$4 sm:$0xff]   ;;  %v2433_v3 = vpop.permute.xlu1 %719  ;;  %v2439_v37 = vpop.permute.xlu0 %734 }
 0x123   :  { %1566 = vmatprep.subr.bf16.mxu0 %v634_v30  ;;  %1709 = vmatprep.subr.bf16.mxu1 %v634_v30 }
 0x126   :  { %1567 = vmatpush3.bf16.msra.mxu0 %v2277_v12  ;;  %1717 = vmatpush3.bf16.msra.mxu1 %v2277_v12  ;;  %v1748_v12 = vld [vmem:[%s2603_s3 + $0x14] ss:$8 sps:$4 sm:$0xff]   ;;  %v2437_v46 = vpop.permute.xlu1 %729  ;;  %v2443_v53 = vpop.permute.xlu0 %744 }
 0x127   :  { %1568 = vmatprep.subr.bf16.mxu0 %v633_v55  ;;  %1710 = vmatprep.subr.bf16.mxu1 %v633_v55 }
 0x12a   :  { %1569 = vmatpush3.bf16.msra.mxu0 %v2269_v48  ;;  %1718 = vmatpush3.bf16.msra.mxu1 %v2269_v48  ;;  %v1750_v48 = vld [vmem:[%s2603_s3 + $0x64] ss:$8 sps:$4 sm:$0xff]   ;;  %v2441_v47 = vpop.permute.xlu1 %739  ;;  %v2447_v59 = vpop.permute.xlu0 %754 }
 0x12b   :  { %1570 = vmatprep.subr.bf16.mxu0 %v632_v23  ;;  %1711 = vmatprep.subr.bf16.mxu1 %v632_v23 }
 0x12e   :  { %1571 = vmatpush3.bf16.msra.mxu0 %v2271_v54  ;;  %1719 = vmatpush3.bf16.msra.mxu1 %v2271_v54  ;;  %v1753_v54 = vld [vmem:[%s2603_s3 + $0x60] ss:$8 sps:$4 sm:$0xff]   ;;  %v2445_v15 = vpop.permute.xlu1 %749  ;;  %v2451_v52 = vpop.permute.xlu0 %764  ;;  %s1813_s3 = smov [#allocation3]  }
 0x12f   :  { %s1464_s23 = sshll.u32 %s1813_s3, 4  ;;  %s1465_s23 = int_to_ptr.vmem [resolvable:$true] %s1464_s23 }
 0x130   :  { %s1790_s24 = scalar_lea.vmem %s1465_s23, 16  ;;  %s1794_s25 = scalar_lea.vmem %s1465_s23, 32 }
 0x131   :  { %1025 = vmatmul.mubr.bf16.vlgmr.msra.gmra.mxu0 %v1745_v6  ;;  %1065 = vmatmul.mubr.bf16.vlgmr.msra.gmra.mxu1 %v1742_v19  ;;  %p1791_p0 = scmp.ne.s32.totalorder %s1465_s23, %s1790_s24  ;;  %p1795_p1 = scmp.lt.s32.totalorder %s1465_s23, %s1465_s23 }
 0x132   :  { %1032 = vmatprep.mubr.bf16.mxu0 %v1748_v12  ;;  %1072 = vmatprep.mubr.bf16.mxu1 %v1750_v48  ;;  %v2449_v31 = vpop.permute.xlu1 %759  ;;  %v2455_v56 = vpop.permute.xlu0 %774  ;;  %p1796_p2 = scmp.lt.s32.totalorder %s1794_s25, %s1790_s24 }
 0x133   :  { %2608 = vst [vmem:[#allocation6_spill] sm:$0xff] %v2455_v56 }
 0x134   :  { %p1797_p3 = por %p1796_p2, %p1795_p1 }
 0x136   :  { %v2453_v9 = vpop.permute.xlu1 %769  ;;  %v2459_v50 = vpop.permute.xlu0 %784  ;;  %p1798_p4 = pnand %p1797_p3, %p1791_p0 }
 0x137   :  { %2610 = vst [vmem:[#allocation8_spill] sm:$0xff] %v2459_v50 }
 0x139   :  { %1033 = vmatmul.mubr.bf16.gmra.mxu0 %v1752_v22  ;;  %1073 = vmatmul.mubr.bf16.gmra.mxu1 %v1753_v54 }
 0x13a   :  { %1040 = vmatprep.mubr.bf16.mxu0 %v1754_v26  ;;  %1080 = vmatprep.mubr.bf16.mxu1 %v1756_v57  ;;  %v2457_v27 = vpop.permute.xlu1 %779  ;;  %v2463_v34 = vpop.permute.xlu0 %794 }
 0x13b   :  { %2609 = vst [vmem:[#allocation7_spill] sm:$0xff] %v2457_v27  ;;  %2612 = vst [vmem:[#allocation10_spill] sm:$0xff] %v2463_v34 }
 0x13e   :  { %v2461_v7 = vpop.permute.xlu1 %789  ;;  %v2467_v4 = vpop.permute.xlu0 %804 }
 0x13f   :  { %2611 = vst [vmem:[#allocation9_spill] sm:$0xff] %v2461_v7  ;;  %2614 = vst [vmem:[#allocation12_spill] sm:$0xff] %v2467_v4 }
 0x141   :  { %1041 = vmatmul.mubr.bf16.gmra.mxu0 %v1758_v58  ;;  %1081 = vmatmul.mubr.bf16.gmra.mxu1 %v1759_v60 }
 0x142   :  { %1048 = vmatprep.mubr.bf16.mxu0 %v1760_v61  ;;  %1088 = vmatprep.mubr.bf16.mxu1 %v1762_v63  ;;  %v2465_v51 = vpop.permute.xlu1 %799  ;;  %v2471_v16 = vpop.permute.xlu0 %814 }
 0x143   :  { %2613 = vst [vmem:[#allocation11_spill] sm:$0xff] %v2465_v51  ;;  %2616 = vst [vmem:[#allocation14_spill] sm:$0xff] %v2471_v16 }
 0x146   :  { %v2469_v30 = vpop.permute.xlu1 %809  ;;  %v1220_v55 = vpop.permute.xlu0 %1219 }
 0x147   :  { %2615 = vst [vmem:[#allocation13_spill] sm:$0xff] %v2469_v30 }
 0x149   :  { %1049 = vmatmul.mubr.bf16.gmra.mxu0 %v1764_v0  ;;  %1089 = vmatmul.mubr.bf16.gmra.mxu1 %v1765_v2 }
 0x14a   :  { %1056 = vmatprep.mubr.bf16.mxu0 %v1766_v25  ;;  %1096 = vmatprep.mubr.bf16.mxu1 %v1768_v5  ;;  %v2473_v11 = vpop.permute.xlu1 %819  ;;  %v1230_v1 = vpop.permute.xlu0 %1229 }
 0x14b   :  { %2617 = vst [vmem:[#allocation15_spill] sm:$0xff] %v2473_v11 }
 0x14e   :  { %v1225_v14 = vpop.permute.xlu1 %1224  ;;  %v2481_v22 = vpop.permute.xlu0 %1239 }
 0x151   :  { %1057 = vmatmul.mubr.bf16.gmra.mxu0 %v1770_v20  ;;  %1097 = vmatmul.mubr.bf16.gmra.mxu1 %v1771_v21 }
 0x152   :  { %1104 = vmatprep.mubr.bf16.mxu1 %v1772_v8  ;;  %v2477_v6 = vpop.permute.xlu1 %1234  ;;  %v2491_v0 = vpop.permute.xlu0 %1249 }
 0x156   :  { %v2487_v60 = vpop.permute.xlu1 %1244 }
 0x159   :  { %1105 = vmatmul.mubr.bf16.gmra.mxu1 %v1774_v17 }
 0x15a   :  { %1112 = vmatprep.mubr.bf16.mxu1 %v1775_v28  ;;  %v2497_v21 = vpop.permute.xlu1 %1254  ;;  %v2501_v28 = vpop.permute.xlu0 %1259 }
 0x15e   :  { %v2511_v4 = vpop.permute.xlu0 %1269 }
 0x161   :  { %1113 = vmatmul.mubr.bf16.gmra.mxu1 %v1777_v24 }
 0x162   :  { %1120 = vmatprep.mubr.bf16.mxu1 %v1778_v18 }
 0x169   :  { %1121 = vmatmul.mubr.bf16.gmra.mxu1 %v1780_v41 }
 0x16a   :  { %1128 = vmatprep.mubr.bf16.mxu1 %v1781_v33 }
 0x171   :  { %1129 = vmatmul.mubr.bf16.gmra.mxu1 %v1783_v10 }
 0x172   :  { %1136 = vmatprep.mubr.bf16.mxu1 %v1784_v39 }
 0x179   :  { %1137 = vmatmul.mubr.bf16.gmra.mxu1 %v1786_v29 }
 0x17a   :  { %1144 = vmatprep.mubr.bf16.mxu1 %v1787_v38  ;;  %v2507_v38 = vpop.permute.xlu1 %1264 }
 0x181   :  { %1145 = vmatmul.mubr.bf16.gmra.mxu1 %v1789_v32 }
 0x1f1   :  { %v1572_v23 = vpop.f32.mrf.mxu0  ;;  %v2475_v19 = vpop.f32.mrf.mxu1 }
 0x1f3   :  { %v1573_v12 = vpop.f32.mrf.mxu0  ;;  %v2479_v48 = vpop.f32.mrf.mxu1 }
 0x1f4   :  { %v1574_v33 = vadd.f32 %v1573_v12, %v1572_v23 }
 0x1f5   :  { %v1575_v54 = vpop.f32.mrf.mxu0  ;;  %v2483_v26 = vpop.f32.mrf.mxu1 }
 0x1f6   :  { %v1027_v51 = vadd.f32 %v1574_v33, %v2417_v36 }
 0x1f7   :  { %v1576_v57 = vpop.f32.mrf.mxu0  ;;  %v2485_v58 = vpop.f32.mrf.mxu1 }
 0x1f8   :  { %v1577_v24 = vadd.f32 %v1576_v57, %v1575_v54 }
 0x1f9   :  { %v1578_v61 = vpop.f32.mrf.mxu0  ;;  %v2489_v63 = vpop.f32.mrf.mxu1 }
 0x1fa   :  { %v1030_v32 = vadd.f32 %v1577_v24, %v680_v62 }
 0x1fb   :  { %v1579_v2 = vpop.f32.mrf.mxu0  ;;  %v2493_v25 = vpop.f32.mrf.mxu1 }
 0x1fc   :  { %v1580_v10 = vadd.f32 %v1579_v2, %v1578_v61  ;;  %v1154_v12 = vmax.f32 %v1030_v32, 0.0 }
 0x1fd   :  { %v1581_v5 = vpop.f32.mrf.mxu0  ;;  %v2495_v20 = vpop.f32.mrf.mxu1 }
 0x1fe   :  { %v1035_v54 = vadd.f32 %v1580_v10, %v2419_v43  ;;  %v2525_v43 = vpop.permute.xlu0 %1279 }
 0x1ff   :  { %v1582_v8 = vpop.f32.mrf.mxu0  ;;  %v2499_v17 = vpop.f32.mrf.mxu1 }
 0x200   :  { %v1583_v11 = vadd.f32 %v1582_v8, %v1581_v5  ;;  %v2520_v5 = vpop.permute.xlu1 %1274  ;;  %v1153_v8 = vmax.f32 %v1027_v51, 0.0  ;;  %v1155_v24 = vmax.f32 %v1035_v54, 0.0 }
 0x201   :  { %v1584_v18 = vpop.f32.mrf.mxu0  ;;  %v2503_v41 = vpop.f32.mrf.mxu1 }
 0x202   :  { %v1038_v61 = vadd.f32 %v1583_v11, %v2421_v13  ;;  %v1377_v11 = vmul.f32 %v1220_v55, %v1153_v8  ;;  %v1379_v32 = vmul.f32 %v1230_v1, %v1155_v24  ;;  %v1604_v8 = vadd.f32 %v2479_v48, %v2475_v19 }
 0x203   :  { %v1585_v39 = vpop.f32.mrf.mxu0  ;;  %v2505_v29 = vpop.f32.mrf.mxu1  ;;  %v1610_v48 = vadd.f32 %v2493_v25, %v2489_v63 }
 0x204   :  { %v1586_v57 = vadd.f32 %v1585_v39, %v1584_v18  ;;  %v1378_v18 = vmul.f32 %v1225_v14, %v1154_v12  ;;  %v1156_v10 = vmax.f32 %v1038_v61, 0.0  ;;  %v1067_v19 = vadd.f32 %v1604_v8, %v2435_v45 }
 0x205   :  { %v1587_v16 = vpop.f32.mrf.mxu0  ;;  %v2509_v30 = vpop.f32.mrf.mxu1  ;;  %v1616_v25 = vadd.f32 %v2505_v29, %v2503_v41 }
 0x206   :  { %v1043_v50 = vadd.f32 %v1586_v57, %v2423_v35  ;;  %v2533_v57 = vpop.permute.xlu1 %1284  ;;  %v1409_v56 = vadd.f32 %v1378_v18, %v1377_v11  ;;  %v1380_v14 = vmul.f32 %v2477_v6, %v1156_v10 }
 0x207   :  { %v1588_v34 = vpop.f32.mrf.mxu0  ;;  %v2515_v23 = vpop.f32.mrf.mxu1  ;;  %v1083_v41 = vadd.f32 %v1616_v25, %v2443_v53  ;;  %v2618_v25 = vld [vmem:[#allocation6_spill] sm:$0xff] }
 0x208   :  { %v1589_v2 = vadd.f32 %v1588_v34, %v1587_v16  ;;  %v1157_v27 = vmax.f32 %v1043_v50, 0.0  ;;  %v1410_v55 = vadd.f32 %v1409_v56, %v1379_v32 }
 0x209   :  { %v1590_v7 = vpop.f32.mrf.mxu0  ;;  %v2518_v62 = vpop.f32.mrf.mxu1  ;;  %v1167_v53 = vmax.f32 %v1083_v41, 0.0 }
 0x20a   :  { %v1046_v39 = vadd.f32 %v1589_v2, %v2425_v49  ;;  %v2538_v2 = vpop.permute.xlu0 %1289  ;;  %v1381_v50 = vmul.f32 %v2481_v22, %v1157_v27  ;;  %v1411_v18 = vadd.f32 %v1410_v55, %v1380_v14  ;;  %v2547_v11 = vpop.permute.xlu1 %1294  ;;  %v1075_v55 = vadd.f32 %v1610_v48, %v2439_v37 }
 0x20b   :  { %v1591_v36 = vpop.f32.mrf.mxu0  ;;  %v2523_v33 = vpop.f32.mrf.mxu1 }
 0x20c   :  { %v1592_v13 = vadd.f32 %v1591_v36, %v1590_v7  ;;  %v1158_v12 = vmax.f32 %v1046_v39, 0.0  ;;  %v1412_v27 = vadd.f32 %v1411_v18, %v1381_v50  ;;  %v1165_v37 = vmax.f32 %v1075_v55, 0.0 }
 0x20d   :  { %v1593_v34 = vpop.f32.mrf.mxu0  ;;  %v2528_v16 = vpop.f32.mrf.mxu1 }
 0x20e   :  { %v1051_v51 = vadd.f32 %v1592_v13, %v2427_v40  ;;  %v1382_v6 = vmul.f32 %v2487_v60, %v1158_v12  ;;  %v1607_v13 = vadd.f32 %v2485_v58, %v2483_v26  ;;  %v2555_v14 = vpop.permute.xlu0 %1299 }
 0x20f   :  { %v1594_v54 = vpop.f32.mrf.mxu0  ;;  %v2531_v35 = vpop.f32.mrf.mxu1 }
 0x210   :  { %v1595_v61 = vadd.f32 %v1594_v54, %v1593_v34  ;;  %v1159_v1 = vmax.f32 %v1051_v51, 0.0  ;;  %v1413_v51 = vadd.f32 %v1412_v27, %v1382_v6  ;;  %v1070_v12 = vadd.f32 %v1607_v13, %v2437_v46 }
 0x211   :  { %v1596_v49 = vpop.f32.mrf.mxu0  ;;  %v2536_v7 = vpop.f32.mrf.mxu1  ;;  %v1622_v6 = vadd.f32 %v2523_v33, %v2518_v62 }
 0x212   :  { %v1054_v40 = vadd.f32 %v1595_v61, %v2429_v44  ;;  %v1383_v44 = vmul.f32 %v2491_v0, %v1159_v1  ;;  %v1164_v46 = vmax.f32 %v1070_v12, 0.0 }
 0x213   :  { %v1597_v24 = vpop.f32.mrf.mxu0  ;;  %v1627_v36 = vpop.f32.mrf.mxu1 }
 0x214   :  { %v1160_v10 = vmax.f32 %v1054_v40, 0.0  ;;  %v1598_v39 = vadd.f32 %v1597_v24, %v1596_v49  ;;  %v1414_v0 = vadd.f32 %v1413_v51, %v1383_v44  ;;  %v1305_v40 = vpop.permute.xlu1 %1304  ;;  %v1091_v44 = vadd.f32 %v1622_v6, %v2447_v59 }
 0x215   :  { %v1599_v34 = vpop.f32.mrf.mxu0  ;;  %v1629_v56 = vpop.f32.mrf.mxu1  ;;  %v1628_v62 = vadd.f32 %v1627_v36, %v2536_v7 }
 0x216   :  { %v1059_v22 = vadd.f32 %v1598_v39, %v2431_v42  ;;  %v1384_v54 = vmul.f32 %v2497_v21, %v1160_v10  ;;  %v1613_v42 = vadd.f32 %v2499_v17, %v2495_v20  ;;  %v1163_v21 = vmax.f32 %v1067_v19, 0.0 }
 0x217   :  { %v1600_v60 = vpop.f32.mrf.mxu0  ;;  %v1630_v32 = vpop.f32.mrf.mxu1  ;;  %v1619_v20 = vadd.f32 %v2515_v23, %v2509_v30  ;;  %v1388_v39 = vmul.f32 %v2520_v5, %v1164_v46  ;;  %v2620_v46 = vld [vmem:[#allocation8_spill] sm:$0xff] }
 0x218   :  { %v1161_v26 = vmax.f32 %v1059_v22, 0.0  ;;  %v1601_v58 = vadd.f32 %v1600_v60, %v1599_v34  ;;  %v1415_v50 = vadd.f32 %v1414_v0, %v1384_v54  ;;  %v1078_v24 = vadd.f32 %v1613_v42, %v2441_v47  ;;  %v1315_v34 = vpop.permute.xlu1 %1314 }
 0x219   :  { %v1632_v61 = vpop.f32.mrf.mxu1  ;;  %v1387_v18 = vmul.f32 %v2511_v4, %v1163_v21  ;;  %v1086_v30 = vadd.f32 %v1619_v20, %v2445_v15  ;;  %v1389_v4 = vmul.f32 %v2525_v43, %v1165_v37  ;;  %v1631_v5 = vadd.f32 %v1630_v32, %v1629_v56 }
 0x21a   :  { %v1385_v45 = vmul.f32 %v2501_v28, %v1161_v26  ;;  %v1062_v63 = vadd.f32 %v1601_v58, %v2433_v3  ;;  %v1310_v28 = vpop.permute.xlu0 %1309  ;;  %v1166_v13 = vmax.f32 %v1078_v24, 0.0  ;;  %v1169_v54 = vmax.f32 %v1091_v44, 0.0 }
 0x21b   :  { %v1633_v49 = vpop.f32.mrf.mxu1  ;;  %v1168_v15 = vmax.f32 %v1086_v30, 0.0  ;;  %v1099_v43 = vadd.f32 %v1628_v62, %v2451_v52  ;;  %v1102_v7 = vadd.f32 %v1631_v5, %v2453_v9  ;;  %v2619_v9 = vld [vmem:[#allocation7_spill] sm:$0xff] }
 0x21c   :  { %v1162_v1 = vmax.f32 %v1062_v63, 0.0  ;;  %v1416_v17 = vadd.f32 %v1415_v50, %v1385_v45  ;;  %v1390_v48 = vmul.f32 %v2533_v57, %v1166_v13  ;;  %v1634_v59 = vadd.f32 %v1633_v49, %v1632_v61  ;;  %v1325_v58 = vpop.permute.xlu1 %1324  ;;  %v2623_v5 = vld [vmem:[#allocation11_spill] sm:$0xff] }
 0x21d   :  { %v1635_v8 = vpop.f32.mrf.mxu1  ;;  %v1392_v56 = vmul.f32 %v2547_v11, %v1168_v15  ;;  %v1171_v45 = vmax.f32 %v1099_v43, 0.0  ;;  %v1172_v21 = vmax.f32 %v1102_v7, 0.0  ;;  %v2625_v7 = vld [vmem:[#allocation13_spill] sm:$0xff] }
 0x21e   :  { %v1386_v3 = vmul.f32 %v2507_v38, %v1162_v1  ;;  %v1625_v38 = vadd.f32 %v2531_v35, %v2528_v16  ;;  %v1320_v22 = vpop.permute.xlu0 %1319  ;;  %v1391_v35 = vmul.f32 %v2538_v2, %v1167_v53  ;;  %v1393_v2 = vmul.f32 %v2555_v14, %v1169_v54 }
 0x21f   :  { %v1636_v29 = vpop.f32.mrf.mxu1  ;;  %v1107_v52 = vadd.f32 %v1634_v59, %v2618_v25  ;;  %v1395_v20 = vmul.f32 %v1310_v28, %v1171_v45  ;;  %v2626_v25 = vld [vmem:[#allocation14_spill] sm:$0xff] }
 0x220   :  { %v1417_v10 = vadd.f32 %v1416_v17, %v1386_v3  ;;  %v1094_v60 = vadd.f32 %v1625_v38, %v2449_v31  ;;  %v1637_v12 = vadd.f32 %v1636_v29, %v1635_v8  ;;  %v1335_v11 = vpop.permute.xlu1 %1334  ;;  %v1396_v29 = vmul.f32 %v1315_v34, %v1172_v21 }
 0x221   :  { %v1638_v47 = vpop.f32.mrf.mxu1  ;;  %v1173_v3 = vmax.f32 %v1107_v52, 0.0 }
 0x222   :  { %v1418_v23 = vadd.f32 %v1417_v10, %v1387_v18  ;;  %v1170_v32 = vmax.f32 %v1094_v60, 0.0  ;;  %v1330_v42 = vpop.permute.xlu0 %1329  ;;  %v1110_v50 = vadd.f32 %v1637_v12, %v2619_v9  ;;  %v2621_v10 = vld [vmem:[#allocation9_spill] sm:$0xff] }
 0x223   :  { %v1639_v27 = vpop.f32.mrf.mxu1  ;;  %v1397_v38 = vmul.f32 %v1320_v22, %v1173_v3 }
 0x224   :  { %v1419_v33 = vadd.f32 %v1418_v23, %v1388_v39  ;;  %v1640_v31 = vadd.f32 %v1639_v27, %v1638_v47  ;;  %v1394_v49 = vmul.f32 %v1305_v40, %v1170_v32  ;;  %v1174_v6 = vmax.f32 %v1110_v50, 0.0  ;;  %v2622_v23 = vld [vmem:[#allocation10_spill] sm:$0xff] }
 0x225   :  { %v1641_v19 = vpop.f32.mrf.mxu1 }
 0x226   :  { %v1420_v16 = vadd.f32 %v1419_v33, %v1389_v4  ;;  %v1115_v24 = vadd.f32 %v1640_v31, %v2620_v46  ;;  %v1340_v14 = vpop.permute.xlu0 %1339  ;;  %v1345_v4 = vpop.permute.xlu1 %1344  ;;  %v1398_v62 = vmul.f32 %v1325_v58, %v1174_v6 }
 0x227   :  { %v1642_v51 = vpop.f32.mrf.mxu1 }
 0x228   :  { %v1421_v26 = vadd.f32 %v1420_v16, %v1390_v48  ;;  %v1643_v1 = vadd.f32 %v1642_v51, %v1641_v19  ;;  %v1175_v47 = vmax.f32 %v1115_v24, 0.0  ;;  %v2627_v24 = vld [vmem:[#allocation15_spill] sm:$0xff] }
 0x229   :  { %v1644_v36 = vpop.f32.mrf.mxu1 }
 0x22a   :  { %v1422_v57 = vadd.f32 %v1421_v26, %v1391_v35  ;;  %v1118_v39 = vadd.f32 %v1643_v1, %v2621_v10  ;;  %v1350_v19 = vpop.permute.xlu0 %1349  ;;  %v1399_v48 = vmul.f32 %v1330_v42, %v1175_v47  ;;  %v2624_v35 = vld [vmem:[#allocation12_spill] sm:$0xff] }
 0x22b   :  { %v1645_v0 = vpop.f32.mrf.mxu1 }
 0x22c   :  { %v1423_v63 = vadd.f32 %v1422_v57, %v1392_v56  ;;  %v1646_v41 = vadd.f32 %v1645_v0, %v1644_v36  ;;  %v1176_v33 = vmax.f32 %v1118_v39, 0.0  ;;  %v1355_v56 = vpop.permute.xlu1 %1354 }
 0x22d   :  { %v1647_v61 = vpop.f32.mrf.mxu1 }
 0x22e   :  { %v1424_v55 = vadd.f32 %v1423_v63, %v1393_v2  ;;  %v1123_v53 = vadd.f32 %v1646_v41, %v2622_v23  ;;  %v1400_v26 = vmul.f32 %v1335_v11, %v1176_v33  ;;  %v825_v0 = vpop.permute.xlu0 %824 }
 0x22f   :  { %v1648_v8 = vpop.f32.mrf.mxu1 }
 0x230   :  { %v1425_v17 = vadd.f32 %v1424_v55, %v1394_v49  ;;  %v1649_v40 = vadd.f32 %v1648_v8, %v1647_v61  ;;  %v1177_v16 = vmax.f32 %v1123_v53, 0.0  ;;  %v1360_v9 = vpop.permute.xlu1 %1359 }
 0x231   :  { %v1650_v18 = vpop.f32.mrf.mxu1 }
 0x232   :  { %v1426_v37 = vadd.f32 %v1425_v17, %v1395_v20  ;;  %v1126_v34 = vadd.f32 %v1649_v40, %v2623_v5  ;;  %v1401_v57 = vmul.f32 %v1340_v14, %v1177_v16  ;;  %v830_v20 = vpop.permute.xlu0 %829 }
 0x233   :  { %v1651_v13 = vpop.f32.mrf.mxu1 }
 0x234   :  { %v1427_v30 = vadd.f32 %v1426_v37, %v1396_v29  ;;  %v1652_v27 = vadd.f32 %v1651_v13, %v1650_v18  ;;  %v1178_v59 = vmax.f32 %v1126_v34, 0.0  ;;  %v1365_v6 = vpop.permute.xlu1 %1364 }
 0x235   :  { %v1653_v28 = vpop.f32.mrf.mxu1 }
 0x236   :  { %v1428_v44 = vadd.f32 %v1427_v30, %v1397_v38  ;;  %v1131_v51 = vadd.f32 %v1652_v27, %v2624_v35  ;;  %v1402_v45 = vmul.f32 %v1345_v4, %v1178_v59  ;;  %v1370_v30 = vpop.permute.xlu0 %1369 }
 0x237   :  { %v1654_v15 = vpop.f32.mrf.mxu1 }
 0x238   :  { %v1429_v60 = vadd.f32 %v1428_v44, %v1398_v62  ;;  %v1655_v54 = vadd.f32 %v1654_v15, %v1653_v28  ;;  %v1179_v12 = vmax.f32 %v1131_v51, 0.0  ;;  %v1375_v4 = vpop.permute.xlu1 %1374  ;;  %v1452_v62 = vlaneseq }
 0x239   :  { %v1656_v43 = vpop.f32.mrf.mxu1 }
 0x23a   :  { %v1430_v22 = vadd.f32 %v1429_v60, %v1399_v48  ;;  %v1134_v36 = vadd.f32 %v1655_v54, %v2625_v7  ;;  %v1403_v49 = vmul.f32 %v1350_v19, %v1179_v12  ;;  %v1453_v34 = vshrl.u32 %v1452_v62, 7  ;;  %v1450_v16 = vpop.permute.xlu0 %1449 }
 0x23b   :  { %v1657_v32 = vpop.f32.mrf.mxu1 }
 0x23c   :  { %v1431_v58 = vadd.f32 %v1430_v22, %v1400_v26  ;;  %v1658_v31 = vadd.f32 %v1657_v32, %v1656_v43  ;;  %v1180_v63 = vmax.f32 %v1134_v36, 0.0  ;;  %v1454_v15 = vsub.s32 0, %v1453_v34 }
 0x23d   :  { %v1659_v42 = vpop.f32.mrf.mxu1 }
 0x23e   :  { %v1432_v2 = vadd.f32 %v1431_v58, %v1401_v57  ;;  %v1139_v52 = vadd.f32 %v1658_v31, %v2626_v25  ;;  %v1404_v11 = vmul.f32 %v1355_v56, %v1180_v63  ;;  %v1455_v51 = vrot.slane %v1450_v16, %v1454_v15 }
 0x23f   :  { %v1660_v21 = vpop.f32.mrf.mxu1 }
 0x240   :  { %v1433_v61 = vadd.f32 %v1432_v2, %v1402_v45  ;;  %v1661_v55 = vadd.f32 %v1660_v21, %v1659_v42  ;;  %v1181_v46 = vmax.f32 %v1139_v52, 0.0 }
 0x241   :  { %v1662_v50 = vpop.f32.mrf.mxu1 }
 0x242   :  { %v1434_v1 = vadd.f32 %v1433_v61, %v1403_v49  ;;  %v1142_v8 = vadd.f32 %v1661_v55, %v2627_v24  ;;  %v1405_v18 = vmul.f32 %v1360_v9, %v1181_v46 }
 0x243   :  { %v1663_v17 = vpop.f32.mrf.mxu1 }
 0x244   :  { %v1435_v3 = vadd.f32 %v1434_v1, %v1404_v11  ;;  %v1182_v41 = vmax.f32 %v1142_v8, 0.0  ;;  %v1664_v14 = vadd.f32 %v1663_v17, %v1662_v50 }
 0x245   :  { %v1665_v29 = vpop.f32.mrf.mxu1 }
 0x246   :  { %v1147_v37 = vadd.f32 %v1664_v14, %v825_v0  ;;  %v1436_v39 = vadd.f32 %v1435_v3, %v1405_v18  ;;  %v1406_v40 = vmul.f32 %v1365_v6, %v1182_v41 }
 0x247   :  { %v1666_v10 = vpop.f32.mrf.mxu1 }
 0x248   :  { %v1183_v47 = vmax.f32 %v1147_v37, 0.0  ;;  %v1667_v13 = vadd.f32 %v1666_v10, %v1665_v29  ;;  %v1437_v53 = vadd.f32 %v1436_v39, %v1406_v40 }
 0x24a   :  { %v1407_v38 = vmul.f32 %v1370_v30, %v1183_v47  ;;  %v1150_v23 = vadd.f32 %v1667_v13, %v830_v20 }
 0x24c   :  { %v1184_v27 = vmax.f32 %v1150_v23, 0.0  ;;  %v1438_v28 = vadd.f32 %v1437_v53, %v1407_v38 }
 0x24e   :  { %v1408_v44 = vmul.f32 %v1375_v4, %v1184_v27 }
 0x250   :  { %v1439_v33 = vadd.f32 %v1438_v28, %v1408_v44 }
 0x252   :  { %v1440_v5 = vrot.slane %v1439_v33, 4 }
 0x254   :  { %v1441_v19 = vadd.f32 %v1440_v5, %v1439_v33 }
 0x256   :  { %v1442_v48 = vrot.slane %v1441_v19, 2 }
 0x258   :  { %v1443_v60 = vadd.f32 %v1442_v48, %v1441_v19 }
 0x25a   :  { %v1444_v35 = vrot.slane %v1443_v60, 1 }
 0x25c   :  { %v1445_v54 = vadd.f32 %v1444_v35, %v1443_v60 }
 0x25e   :  { %v1456_v43 = vadd.f32 %v1455_v51, %v1445_v54 }
 0x260   :  { %1457 = vst [vmem:[#allocation3] sm:$0x1] %v1456_v43 }
 0x261   :  { %1801 = shalt.err (!%p1798_p4)
}
 0x262   :  { %1467 = dma.vmem_to_hbm [thread:$0]  %s1465_s23, 16, %s2607_s7, [#allocation4]  }
 0x263   :  { %1810 = dma.done.wait [#allocation4], 16  }
 0x264   :  { %1811 = vsyncadd [#allocation4], 4294967280 }
 0x265   :  { %1471 = vsyncpa [#allocation4], 1 }

</bundles_post_ra>
